<compile_context>
chip_gen: v6e
topology: v6e:2x2x1
jax: 0.10.0
libtpu: 0.0.40
codegen_flags: <defaults>
</compile_context>

<pallas_src>
import numpy as np

import jax
import jax.numpy as jnp
from jax.experimental import pallas as pl
from jax.experimental.pallas import tpu as pltpu

ENEMY_SHAPE = 5
ALLY_SHAPE = 5
MOVE_DIR = 4
UNIT_SHAPE = 1
N_ACTIONS = 6


def _round_up(x, m):
    return ((x + m - 1) // m) * m


def drnet_kernel(x_ref, w_ref, b_ref, s_ref, so_ref, o_ref):
    """One batch tile.

    x_ref  : [TB, D]              observation rows (stored dtype)
    w_ref  : [D, eh_pad]          zero-embedded per-entity weights (x dtype)
    b_ref  : [1, eh_pad]          per-entity biases (f32)
    s_ref  : [eh_pad, OUT_P]      0/1 group-reduction matrix (f32)
    so_ref : [D, OUT_P]           0/1 own-feature scatter matrix (x dtype)
    o_ref  : [TB, OUT_P]          lanes [0:H]=enemy sum, [H:2H]=ally sum,
                                  [2H:2H+11]=own features, rest zero pad.
    """
    x = x_ref[...]
    # Single MXU push over all entities at once; f32 accumulation.
    y = jnp.dot(x, w_ref[...], preferred_element_type=jnp.float32)
    # Per-entity bias + relu (relu must precede the group sum).  f32 epilogue.
    y = jnp.maximum(y + b_ref[...], 0.0)
    # Group reduction as a matmul (no cross-lane shuffles, lane-dense store),
    # plus the own-feature scatter fused in (kernel is HBM-bound; extra MXU
    # work with K=D is free).
    grp = jnp.dot(y, s_ref[...], preferred_element_type=jnp.float32)
    own = jnp.dot(x, so_ref[...], preferred_element_type=jnp.float32)
    o_ref[...] = (grp + own).astype(o_ref.dtype)


def _pick_tb(B, D, eh_pad, out_pad, x_bytes, out_bytes, block_b):
    """Batch tile: as large as VMEM allows, >= 2 grid steps when B permits."""
    tb = max(8, min(block_b, _round_up(max(B, 1), 8)))
    if B >= 16:
        # Keep at least 2 grid steps so the parallel axis shards across the
        # two v7x TensorCores (harmless elsewhere).
        tb = min(tb, _round_up(pl.cdiv(B, 2), 8))
    resident = (D * eh_pad * 4 + eh_pad * 4
                + eh_pad * out_pad * 4 + D * out_pad * 4)
    budget = 40 * 1024 * 1024          # conservative across v5e / v6e / v7x
    while tb > 8:
        est = (2 * tb * D * x_bytes            # x tile, double-buffered
               + 2 * tb * out_pad * out_bytes  # out tile, double-buffered
               + tb * eh_pad * 4               # y intermediate (f32)
               + resident)
        if est <= budget:
            break
        tb = max(8, _round_up(tb // 2, 8))
    est = (2 * tb * D * x_bytes + 2 * tb * out_pad * out_bytes
           + tb * eh_pad * 4 + resident)
    return tb, est


def drnet_forward(x, w_e, b_e, w_a, b_a, *, n_agent, block_b=4096,
                  out_dtype=jnp.float32):
    """x: [B, D].  Returns [B, 2*H + 11] in `out_dtype`.

    w_e / w_a are stored pre-transposed as [in_features, H].
    x is streamed in its stored dtype (pass bf16 x to halve the read traffic);
    accumulation and the bias/relu/reduction epilogue are always f32.
    """
    B, D = x.shape
    H = w_e.shape[1]
    n_enemy, n_ally = n_agent, n_agent - 1
    n_ent = n_enemy + n_ally
    eh = n_ent * H
    eh_pad = _round_up(eh, 128)
    own_dim = MOVE_DIR + UNIT_SHAPE + N_ACTIONS              # 11
    out_dim = 2 * H + own_dim
    out_pad = _round_up(out_dim, 128)
    x_dtype = x.dtype

    # ---- wrapper-side weight packing (tiny / constant-foldable) ------------
    w_big = jnp.zeros((D, eh_pad), jnp.float32)
    for g in range(n_enemy):
        r = MOVE_DIR + g * ENEMY_SHAPE
        w_big = w_big.at[r:r + ENEMY_SHAPE, g * H:(g + 1) * H].set(w_e)
    ally_row0 = MOVE_DIR + ENEMY_SHAPE * n_enemy
    for g in range(n_ally):
        r = ally_row0 + g * ALLY_SHAPE
        c = (n_enemy + g) * H
        w_big = w_big.at[r:r + ALLY_SHAPE, c:c + H].set(w_a)
    w_big = w_big.astype(x_dtype)                             # [D, eh_pad]

    b_big = jnp.zeros((1, eh_pad), jnp.float32)
    b_big = b_big.at[0, :n_enemy * H].set(jnp.tile(b_e, n_enemy))
    b_big = b_big.at[0, n_enemy * H:eh].set(jnp.tile(b_a, n_ally))

    # 0/1 group-reduction matrix: enemy groups -> lanes [0:H], allies -> [H:2H]
    s_np = np.zeros((eh_pad, out_pad), np.float32)
    eye = np.eye(H, dtype=np.float32)
    for g in range(n_enemy):
        s_np[g * H:(g + 1) * H, 0:H] = eye
    for g in range(n_ally):
        s_np[(n_enemy + g) * H:(n_enemy + g + 1) * H, H:2 * H] = eye
    s_mat = jnp.asarray(s_np)                                 # [eh_pad, out_pad]

    # 0/1 own-feature scatter: x[:, :4] and x[:, -(A+7):-A] -> lanes [2H:2H+11]
    so_np = np.zeros((D, out_pad), np.float32)
    for j in range(MOVE_DIR):
        so_np[j, 2 * H + j] = 1.0
    own_src0 = D - (n_agent + N_ACTIONS + UNIT_SHAPE)
    for j in range(UNIT_SHAPE + N_ACTIONS):
        so_np[own_src0 + j, 2 * H + MOVE_DIR + j] = 1.0
    s_own = jnp.asarray(so_np).astype(x_dtype)                # [D, out_pad]

    # ---- batch tiling (no wrapper-side pad; partial last block is fine) ----
    x_bytes = jnp.dtype(x_dtype).itemsize
    out_bytes = jnp.dtype(out_dtype).itemsize
    tb, vmem_est = _pick_tb(B, D, eh_pad, out_pad, x_bytes, out_bytes, block_b)
    n_steps = pl.cdiv(B, tb)

    cp_kwargs = {"dimension_semantics": ("parallel",)}
    vmem_req = int(1.25 * vmem_est) + (2 << 20)
    if vmem_req > (16 << 20):
        cp_kwargs["vmem_limit_bytes"] = min(vmem_req, 64 << 20)

    out = pl.pallas_call(
        drnet_kernel,
        out_shape=jax.ShapeDtypeStruct((B, out_pad), out_dtype),
        grid=(n_steps,),
        in_specs=[
            pl.BlockSpec((tb, D), lambda i: (i, 0)),           # streamed x
            pl.BlockSpec((D, eh_pad), lambda i: (0, 0)),       # resident W
            pl.BlockSpec((1, eh_pad), lambda i: (0, 0)),       # resident bias
            pl.BlockSpec((eh_pad, out_pad), lambda i: (0, 0)), # resident S
            pl.BlockSpec((D, out_pad), lambda i: (0, 0)),      # resident S_own
        ],
        out_specs=pl.BlockSpec((tb, out_pad), lambda i: (i, 0)),
        compiler_params=pltpu.CompilerParams(**cp_kwargs),
    )(x, w_big, b_big, s_mat, s_own)

    # Only the lane slice remains outside the kernel (module returns [B, 75]).
    return out[:, :out_dim]


def drnet_reference(x, w_e, b_e, w_a, b_a, *, n_agent):
    """Pure-JAX reference mirroring the PyTorch forward exactly."""
    n_enemy = n_agent
    n_ally = n_agent - 1
    D = x.shape[1]
    e_sum = 0.0
    for i in range(n_enemy):
        s = MOVE_DIR + i * ENEMY_SHAPE
        e_sum = e_sum + jax.nn.relu(x[:, s:s + ENEMY_SHAPE] @ w_e + b_e)
    a_sum = 0.0
    base = MOVE_DIR + ENEMY_SHAPE * n_enemy
    for i in range(n_ally):
        s = base + i * ALLY_SHAPE
        a_sum = a_sum + jax.nn.relu(x[:, s:s + ALLY_SHAPE] @ w_a + b_a)
    own = jnp.concatenate(
        [x[:, :MOVE_DIR],
         x[:, D - (n_agent + N_ACTIONS + UNIT_SHAPE):D - n_agent]], axis=-1)
    return jnp.concatenate([e_sum, a_sum, own], axis=-1)


if __name__ == "__main__":
    key = jax.random.PRNGKey(0)
    n_agent = 4          # agent_num
    H = 32               # output_shape
    B = 2                # batch

    # SMAC-like observation width:
    # move(4) + enemies(5*A) + allies(5*(A-1)) + unit(1) + actions(6) + id(A)
    D = (MOVE_DIR + ENEMY_SHAPE * n_agent + ALLY_SHAPE * (n_agent - 1)
         + UNIT_SHAPE + N_ACTIONS + n_agent)

    k1, k2, k3, k4, k5, k6 = jax.random.split(key, 6)
    x = jax.random.normal(k1, (B, D), dtype=jnp.float32)

    # Deterministic nn.Linear-style init: U(-1/sqrt(fan_in), 1/sqrt(fan_in)).
    bound = 1.0 / (ENEMY_SHAPE ** 0.5)
    w_e = jax.random.uniform(k2, (ENEMY_SHAPE, H), jnp.float32, -bound, bound)
    b_e = jax.random.uniform(k3, (H,), jnp.float32, -bound, bound)
    w_a = jax.random.uniform(k4, (ALLY_SHAPE, H), jnp.float32, -bound, bound)
    b_a = jax.random.uniform(k5, (H,), jnp.float32, -bound, bound)

    out_dim = 2 * H + MOVE_DIR + N_ACTIONS + UNIT_SHAPE

    # --- f32 path, tiny batch (single partial block) --------------------------
    out = drnet_forward(x, w_e, b_e, w_a, b_a, n_agent=n_agent)
    out = jax.block_until_ready(out)
    ref = drnet_reference(x, w_e, b_e, w_a, b_a, n_agent=n_agent)
    assert out.shape == (B, out_dim)
    assert jnp.allclose(out, ref, atol=1e-5, rtol=1e-5), "f32 mismatch vs reference"

    # --- multi-step grid with a partial last block (no wrapper pad) -----------
    B2 = 260
    x2 = jax.random.normal(k6, (B2, D), dtype=jnp.float32)
    out2 = drnet_forward(x2, w_e, b_e, w_a, b_a, n_agent=n_agent, block_b=128)
    out2 = jax.block_until_ready(out2)
    ref2 = drnet_reference(x2, w_e, b_e, w_a, b_a, n_agent=n_agent)
    assert out2.shape == (B2, out_dim)
    assert jnp.allclose(out2, ref2, atol=1e-5, rtol=1e-5), "tiled mismatch"

    # --- bf16 x streaming + bf16 output writeback (f32 accumulation) ----------
    x2_bf16 = x2.astype(jnp.bfloat16)   # producer-stored bf16 observations
    out3 = drnet_forward(x2_bf16, w_e, b_e, w_a, b_a, n_agent=n_agent,
                         out_dtype=jnp.bfloat16)
    out3 = jax.block_until_ready(out3)
    assert out3.dtype == jnp.bfloat16
    assert jnp.allclose(out3.astype(jnp.float32), ref2, atol=2e-1, rtol=1e-1), \
        "bf16 mismatch"

    print("KERNEL_OK")
</pallas_src>

<mosaic_0001>
module attributes {stable_mosaic.version = 11 : i64} {
  func.func @drnet_kernel(%arg0: i32, %arg1: memref<8x50xf32, #tpu.memory_space<vmem>>, %arg2: memref<50x256xf32, #tpu.memory_space<vmem>>, %arg3: memref<1x256xf32, #tpu.memory_space<vmem>>, %arg4: memref<256x128xf32, #tpu.memory_space<vmem>>, %arg5: memref<50x128xf32, #tpu.memory_space<vmem>>, %arg6: memref<8x128xf32, #tpu.memory_space<vmem>>) attributes {dimension_semantics = [#tpu.dimension_semantics<parallel>], iteration_bounds = array<i64: 1>, scalar_prefetch = 0 : i64, scratch_operands = 0 : i64, tpu.core_type = #tpu.core_type<tc>, window_params = [{transform_indices = @transform_0, window_bounds = array<i64: 8, 50>}, {pipeline_mode = #tpu.pipeline_mode<synchronous>, transform_indices = @transform_1, window_bounds = array<i64: 50, 256>}, {pipeline_mode = #tpu.pipeline_mode<synchronous>, transform_indices = @transform_2, window_bounds = array<i64: 1, 256>}, {pipeline_mode = #tpu.pipeline_mode<synchronous>, transform_indices = @transform_3, window_bounds = array<i64: 256, 128>}, {pipeline_mode = #tpu.pipeline_mode<synchronous>, transform_indices = @transform_4, window_bounds = array<i64: 50, 128>}, {transform_indices = @transform_5, window_bounds = array<i64: 8, 128>}]} {
    %c0 = arith.constant 0 : index
    %c0_0 = arith.constant 0 : index
    %0 = vector.load %arg1[%c0, %c0_0] : memref<8x50xf32, #tpu.memory_space<vmem>>, vector<8x50xf32>
    %c0_1 = arith.constant 0 : index
    %c0_2 = arith.constant 0 : index
    %1 = vector.load %arg2[%c0_1, %c0_2] : memref<50x256xf32, #tpu.memory_space<vmem>>, vector<50x256xf32>
    %cst = arith.constant dense<0.000000e+00> : vector<8x256xf32>
    %2 = tpu.matmul %0, %1, %cst {dimension_numbers = #tpu.dot_dimension_numbers<[1], [0], [0], [1], [0, 0, 1, 1], [], []>} : vector<8x50xf32>, vector<50x256xf32>, vector<8x256xf32> -> vector<8x256xf32>
    %c0_3 = arith.constant 0 : index
    %c0_4 = arith.constant 0 : index
    %3 = vector.load %arg3[%c0_3, %c0_4] : memref<1x256xf32, #tpu.memory_space<vmem>>, vector<1x256xf32>
    %4 = vector.broadcast %3 : vector<1x256xf32> to vector<8x256xf32>
    %5 = arith.addf %2, %4 : vector<8x256xf32>
    %cst_5 = arith.constant 0.000000e+00 : f32
    %6 = vector.broadcast %cst_5 : f32 to vector<8x256xf32>
    %7 = arith.maximumf %5, %6 : vector<8x256xf32>
    %c0_6 = arith.constant 0 : index
    %c0_7 = arith.constant 0 : index
    %8 = vector.load %arg4[%c0_6, %c0_7] : memref<256x128xf32, #tpu.memory_space<vmem>>, vector<256x128xf32>
    %cst_8 = arith.constant dense<0.000000e+00> : vector<8x128xf32>
    %9 = tpu.matmul %7, %8, %cst_8 {dimension_numbers = #tpu.dot_dimension_numbers<[1], [0], [0], [1], [0, 0, 1, 1], [], []>} : vector<8x256xf32>, vector<256x128xf32>, vector<8x128xf32> -> vector<8x128xf32>
    %c0_9 = arith.constant 0 : index
    %c0_10 = arith.constant 0 : index
    %10 = vector.load %arg5[%c0_9, %c0_10] : memref<50x128xf32, #tpu.memory_space<vmem>>, vector<50x128xf32>
    %cst_11 = arith.constant dense<0.000000e+00> : vector<8x128xf32>
    %11 = tpu.matmul %0, %10, %cst_11 {dimension_numbers = #tpu.dot_dimension_numbers<[1], [0], [0], [1], [0, 0, 1, 1], [], []>} : vector<8x50xf32>, vector<50x128xf32>, vector<8x128xf32> -> vector<8x128xf32>
    %12 = arith.addf %9, %11 : vector<8x128xf32>
    %c0_12 = arith.constant 0 : index
    %c0_13 = arith.constant 0 : index
    %13 = vector.load %arg6[%c0_12, %c0_13] : memref<8x128xf32, #tpu.memory_space<vmem>>, vector<8x128xf32>
    tpu.vector_store %arg6[%c0_12, %c0_13], %12 {strides = array<i32>} : memref<8x128xf32, #tpu.memory_space<vmem>>, vector<8x128xf32>,
    return
  }
  func.func @transform_0(%arg0: i32) -> (i32, i32) {
    %c0_i32 = arith.constant 0 : i32
    %c0_i32_0 = arith.constant 0 : i32
    return %arg0, %c0_i32 : i32, i32
  }
  func.func @transform_1(%arg0: i32) -> (i32, i32) {
    %c0_i32 = arith.constant 0 : i32
    %c0_i32_0 = arith.constant 0 : i32
    %c0_i32_1 = arith.constant 0 : i32
    return %c0_i32, %c0_i32_0 : i32, i32
  }
  func.func @transform_2(%arg0: i32) -> (i32, i32) {
    %c0_i32 = arith.constant 0 : i32
    %c0_i32_0 = arith.constant 0 : i32
    %c0_i32_1 = arith.constant 0 : i32
    return %c0_i32, %c0_i32_0 : i32, i32
  }
  func.func @transform_3(%arg0: i32) -> (i32, i32) {
    %c0_i32 = arith.constant 0 : i32
    %c0_i32_0 = arith.constant 0 : i32
    %c0_i32_1 = arith.constant 0 : i32
    return %c0_i32, %c0_i32_0 : i32, i32
  }
  func.func @transform_4(%arg0: i32) -> (i32, i32) {
    %c0_i32 = arith.constant 0 : i32
    %c0_i32_0 = arith.constant 0 : i32
    %c0_i32_1 = arith.constant 0 : i32
    return %c0_i32, %c0_i32_0 : i32, i32
  }
  func.func @transform_5(%arg0: i32) -> (i32, i32) {
    %c0_i32 = arith.constant 0 : i32
    %c0_i32_0 = arith.constant 0 : i32
    return %arg0, %c0_i32 : i32, i32
  }
}

</mosaic_0001>

<bundles_post_ra>
// kernel: tpu_custom_call.1
= control target key start
LH: loop header
LB: loop body
LE: loop exit
PB: predicated region body
PF: predicated region fallthrough
CT: control target
= control target key end

     0   :  { %10 = vsyncpa [#allocation3], 0  ;;  %s660_s0 = inlined_call_operand.hbm [shape: f32[2,50], index: 0, kind: input, shape index: {}]   ;;  %s661_s1 = inlined_call_operand.hbm [shape: f32[50,256], index: 1, kind: input, shape index: {}]   ;;  %s662_s2 = inlined_call_operand.vmem [shape: f32[1,256], index: 2, kind: input, shape index: {}]   ;;  %s663_s3 = inlined_call_operand.hbm [shape: f32[256,128], index: 3, kind: input, shape index: {}]   ;;  %s664_s4 = inlined_call_operand.hbm [shape: f32[50,128], index: 4, kind: input, shape index: {}]   ;;  %s665_s5 = inlined_call_operand.hbm [shape: f32[2,128], index: 5, kind: output, shape index: {}]  }
   0x1   :  { %11 = vsyncpa [#allocation6], 0 }
   0x2   :  { %12 = vsyncpa [#allocation9], 0 }
   0x3   :  { %13 = vsyncpa [#allocation4], 0 }
   0x4   :  { %18 = vsyncadd [#allocation3], 96  ;;  %s575_s18 = smov [#allocation5]  }
   0x5   :  { %s31_s19 = sshll.u32 %s575_s18, 4  ;;  %s32_s19 = int_to_ptr.vmem [resolvable:$true] %s31_s19 }
   0x6   :  { %s475_s20 = scalar_lea.vmem %s32_s19, 1792  ;;  %p480_p1 = scmp.lt.s32.totalorder %s32_s19, %s32_s19 }
   0x7   :  { %p476_p0 = scmp.ne.s32.totalorder %s32_s19, %s475_s20  ;;  %p481_p2 = scmp.lt.s32.totalorder %s475_s20, %s475_s20 }
   0x9   :  { %p482_p3 = por %p481_p2, %p480_p1 }
   0xb   :  { %p483_p4 = pnand %p482_p3, %p476_p0 }
   0xd   :  { %486 = shalt.err (!%p483_p4)
}
   0xe   :  { %s576_s21 = smov 256   ;;  %s577_s22 = smov 16  }
   0xf   :  { %37 = dma.hbm_to_vmem [thread:$0]  %s661_s1, 1792, %s32_s19, [#allocation6], %s576_s21, %s576_s21, %s577_s22  }
  0x10   :  { %s578_s25 = smov [#allocation2]  }
  0x11   :  { %s19_s26 = sshll.u32 %s578_s25, 4  ;;  %s20_s26 = int_to_ptr.vmem [resolvable:$true] %s19_s26 }
  0x12   :  { %s495_s27 = scalar_lea.vmem %s20_s26, 32  ;;  %s499_s28 = scalar_lea.vmem %s20_s26, 128 }
  0x13   :  { %p496_p5 = scmp.ne.s32.totalorder %s20_s26, %s495_s27  ;;  %p500_p6 = scmp.lt.s32.totalorder %s20_s26, %s20_s26 }
  0x14   :  { %p501_p7 = scmp.lt.s32.totalorder %s499_s28, %s495_s27 }
  0x16   :  { %p502_p8 = por %p501_p7, %p500_p6 }
  0x18   :  { %p503_p9 = pnand %p502_p8, %p496_p5 }
  0x1a   :  { %506 = shalt.err (!%p503_p9)
}
  0x1b   :  { %s579_s29 = smov 32   ;;  %s580_s30 = smov 2  }
  0x1c   :  { %25 = dma.hbm_to_vmem [thread:$0]  %s660_s0, 32, %s20_s26, [#allocation3], %s579_s29, %s579_s29, %s580_s30  }
  0x1d   :  { %s581_s1 = smov [#allocation7]  }
  0x1e   :  { %s45_s8 = sshll.u32 %s581_s1, 4  ;;  %s46_s8 = int_to_ptr.vmem [resolvable:$true] %s45_s8 }
  0x1f   :  { %s515_s9 = scalar_lea.vmem %s46_s8, 4096  ;;  %p520_p11 = scmp.lt.s32.totalorder %s46_s8, %s46_s8 }
  0x20   :  { %p516_p10 = scmp.ne.s32.totalorder %s46_s8, %s515_s9  ;;  %p521_p12 = scmp.lt.s32.totalorder %s515_s9, %s515_s9 }
  0x22   :  { %p522_p13 = por %p521_p12, %p520_p11 }
  0x24   :  { %p523_p0 = pnand %p522_p13, %p516_p10 }
  0x26   :  { %526 = shalt.err (!%p523_p0)
}
  0x27   :  { %s582_s10 = smov 128   ;;  %s583_s11 = smov 8  }
  0x28   :  { %51 = dma.hbm_to_vmem [thread:$0]  %s663_s3, 4096, %s46_s8, [#allocation6], %s582_s10, %s582_s10, %s583_s11  }
  0x29   :  { %s584_s14 = smov [#allocation8]  }
  0x2a   :  { %s57_s15 = sshll.u32 %s584_s14, 4  ;;  %s58_s15 = int_to_ptr.vmem [resolvable:$true] %s57_s15 }
  0x2b   :  { %s535_s0 = scalar_lea.vmem %s58_s15, 896  ;;  %p540_p2 = scmp.lt.s32.totalorder %s58_s15, %s58_s15 }
  0x2c   :  { %p536_p1 = scmp.ne.s32.totalorder %s58_s15, %s535_s0  ;;  %p541_p3 = scmp.lt.s32.totalorder %s535_s0, %s535_s0 }
  0x2e   :  { %p542_p4 = por %p541_p3, %p540_p2 }
  0x30   :  { %p543_p5 = pnand %p542_p4, %p536_p1 }
  0x32   :  { %546 = shalt.err (!%p543_p5)
}
  0x33   :  { %63 = dma.hbm_to_vmem [thread:$0]  %s664_s4, 896, %s58_s15, [#allocation9], %s582_s10, %s582_s10, %s583_s11  }
  0x34   :  { %567 = dma.done.wait [#allocation3], 128  }
  0x35   :  { %568 = vsyncadd [#allocation3], 4294967168 }
  0x36   :  { %569 = dma.done.wait [#allocation6], 5888  }
  0x37   :  { %570 = vsyncadd [#allocation6], 4294961408 }
  0x38   :  { %571 = dma.done.wait [#allocation9], 896  }
  0x39   :  { %572 = vsyncadd [#allocation9], 4294966400  ;;  %v585_v0 = vmov 0.0   ;;  %vm107_vm0 = vcmask 1041408   ;;  %v90_v1 = vld [vmem:[#allocation5 + $0x68] sm:$0x3]  ;;  %v93_v55 = vlaneseq }
  0x3a   :  { %178 = vmatprep.mubr.f32.mxu1 %v585_v0  ;;  %v89_v2 = vld [vmem:[#allocation5 + $0x60] sm:$0x3]  ;;  %v88_v3 = vld [vmem:[#allocation5 + $0x58] sm:$0xff]  ;;  %389 = vmatprep.subr.msk.mxu1 %vm107_vm0, %v90_v1  ;;  %v87_v4 = vld [vmem:[#allocation5 + $0x50] sm:$0xff]  ;;  %vm103_vm1 = vcmask 408576   ;;  %vm586_vm2 = vmmov 0  }
  0x3b   :  { %390 = vmatpush1.msk.msra.mxu1 %vm107_vm0, %v89_v2  ;;  %v86_v5 = vld [vmem:[#allocation5 + $0x48] sm:$0xff]  ;;  %v85_v6 = vld [vmem:[#allocation5 + $0x40] sm:$0xff]  ;;  %v84_v7 = vld [vmem:[#allocation5 + $0x38] sm:$0xff]  ;;  %v94_v56 = vshrl.u32 %v93_v55, 7 }
  0x3c   :  { %134 = vmatprep.subr.mxu1 %v88_v3  ;;  %v83_v8 = vld [vmem:[#allocation5 + $0x30] sm:$0xff]  ;;  %v218_v9 = vld [vmem:[#allocation7 + $0xf8] sm:$0xff]  ;;  %v217_v11 = vld [vmem:[#allocation7 + $0xf0] sm:$0xff] }
  0x3d   :  { %135 = vmatpush1.msra.mxu1 %v87_v4  ;;  %v202_v10 = vld [vmem:[#allocation7 + $0x78] sm:$0xff]  ;;  %402 = vmatprep.subr.mxu0 %v218_v9  ;;  %v201_v13 = vld [vmem:[#allocation7 + $0x70] sm:$0xff]  ;;  %v216_v15 = vld [vmem:[#allocation7 + $0xe8] sm:$0xff]  ;;  %v95_v57 = vsub.s32 0, %v94_v56  ;;  %v99_v59 = vsub.s32 1, %v94_v56 }
  0x3e   :  { %136 = vmatprep.subr.mxu1 %v86_v5  ;;  %v82_v12 = vld [vmem:[#allocation5 + $0x28] sm:$0xff]  ;;  %v81_v14 = vld [vmem:[#allocation5 + $0x20] sm:$0xff]  ;;  %403 = vmatpush3.msra.mxu0 %v202_v10  ;;  %v80_v16 = vld [vmem:[#allocation5 + $0x18] sm:$0xff] }
  0x3f   :  { %137 = vmatpush1.msra.mxu1 %v85_v6  ;;  %404 = vmatprep.subr.mxu0 %v217_v11  ;;  %v200_v17 = vld [vmem:[#allocation7 + $0x68] sm:$0xff]  ;;  %v79_v18 = vld [vmem:[#allocation5 + $0x10] sm:$0xff]  ;;  %v78_v20 = vld [vmem:[#allocation5 + $0x8] sm:$0xff] }
  0x40   :  { %138 = vmatprep.subr.mxu1 %v84_v7  ;;  %405 = vmatpush3.msra.mxu0 %v201_v13  ;;  %v215_v19 = vld [vmem:[#allocation7 + $0xe0] sm:$0xff]  ;;  %v77_v22 = vld [vmem:[#allocation5] sm:$0xff]  ;;  %v214_v23 = vld [vmem:[#allocation7 + $0xd8] sm:$0xff] }
  0x41   :  { %139 = vmatpush1.msra.mxu1 %v83_v8  ;;  %406 = vmatprep.subr.mxu0 %v216_v15  ;;  %v199_v21 = vld [vmem:[#allocation7 + $0x60] sm:$0xff]  ;;  %v636_v24 = vld [vmem:[#allocation2] sm:$0xff]  ;;  %v198_v25 = vld [vmem:[#allocation7 + $0x58] sm:$0xff] }
  0x42   :  { %140 = vmatprep.subr.mxu1 %v82_v12  ;;  %407 = vmatpush3.msra.mxu0 %v200_v17  ;;  %v213_v26 = vld [vmem:[#allocation7 + $0xd0] sm:$0xff]  ;;  %v212_v29 = vld [vmem:[#allocation7 + $0xc8] sm:$0xff]  ;;  %v211_v32 = vld [vmem:[#allocation7 + $0xc0] sm:$0xff] }
  0x43   :  { %141 = vmatpush1.msra.mxu1 %v81_v14  ;;  %408 = vmatprep.subr.mxu0 %v215_v19  ;;  %v197_v27 = vld [vmem:[#allocation7 + $0x50] sm:$0xff]  ;;  %v196_v30 = vld [vmem:[#allocation7 + $0x48] sm:$0xff]  ;;  %v195_v33 = vld [vmem:[#allocation7 + $0x40] sm:$0xff] }
  0x44   :  { %142 = vmatprep.subr.mxu1 %v80_v16  ;;  %409 = vmatpush3.msra.mxu0 %v199_v21  ;;  %v225_v28 = vld [vmem:[#allocation8 + $0x30] sm:$0x3]  ;;  %v224_v31 = vld [vmem:[#allocation8 + $0x28] sm:$0xff]  ;;  %v210_v34 = vld [vmem:[#allocation7 + $0xb8] sm:$0xff] }
  0x45   :  { %143 = vmatpush1.msra.mxu1 %v79_v18  ;;  %410 = vmatprep.subr.mxu0 %v214_v23  ;;  %v194_v35 = vld [vmem:[#allocation7 + $0x38] sm:$0xff]  ;;  %v209_v36 = vld [vmem:[#allocation7 + $0xb0] sm:$0xff]  ;;  %v208_v38 = vld [vmem:[#allocation7 + $0xa8] sm:$0xff] }
  0x46   :  { %144 = vmatprep.subr.mxu1 %v78_v20  ;;  %411 = vmatpush3.msra.mxu0 %v198_v25  ;;  %v193_v37 = vld [vmem:[#allocation7 + $0x30] sm:$0xff]  ;;  %v192_v39 = vld [vmem:[#allocation7 + $0x28] sm:$0xff]  ;;  %v207_v40 = vld [vmem:[#allocation7 + $0xa0] sm:$0xff] }
  0x47   :  { %145 = vmatpush1.msra.mxu1 %v77_v22  ;;  %412 = vmatprep.subr.mxu0 %v213_v26  ;;  %v191_v41 = vld [vmem:[#allocation7 + $0x20] sm:$0xff]  ;;  %v206_v42 = vld [vmem:[#allocation7 + $0x98] sm:$0xff]  ;;  %v205_v45 = vld [vmem:[#allocation7 + $0x90] sm:$0xff] }
  0x48   :  { %391 = vmatmul.mubr.msk.f32.vlgmr.msra.gmra.mxu1 %vm103_vm1, %v636_v24  ;;  %437 = vmatprep.subr.mxu1 %v585_v0  ;;  %v223_v43 = vld [vmem:[#allocation8 + $0x20] sm:$0xff]  ;;  %v190_v44 = vld [vmem:[#allocation7 + $0x18] sm:$0xff]  ;;  %v189_v47 = vld [vmem:[#allocation7 + $0x10] sm:$0xff] }
  0x49   :  { %413 = vmatpush3.msra.mxu0 %v197_v27  ;;  %438 = vmatpush3.msk.msra.mxu1 %vm107_vm0, %v225_v28  ;;  %v222_v46 = vld [vmem:[#allocation8 + $0x18] sm:$0xff]  ;;  %v204_v48 = vld [vmem:[#allocation7 + $0x88] sm:$0xff]  ;;  %v221_v49 = vld [vmem:[#allocation8 + $0x10] sm:$0xff] }
  0x4a   :  { %414 = vmatprep.subr.mxu0 %v212_v29  ;;  %439 = vmatprep.subr.mxu1 %v585_v0  ;;  %v188_v50 = vld [vmem:[#allocation7 + $0x8] sm:$0xff]  ;;  %v203_v51 = vld [vmem:[#allocation7 + $0x80] sm:$0xff] }
  0x4b   :  { %415 = vmatpush3.msra.mxu0 %v196_v30  ;;  %440 = vmatpush3.msra.mxu1 %v224_v31  ;;  %v220_v52 = vld [vmem:[#allocation8 + $0x8] sm:$0xff]  ;;  %v187_v53 = vld [vmem:[#allocation7] sm:$0xff] }
  0x4c   :  { %416 = vmatprep.subr.mxu0 %v211_v32  ;;  %441 = vmatprep.subr.mxu1 %v585_v0  ;;  %v219_v54 = vld [vmem:[#allocation8] sm:$0xff]  ;;  %v91_v58 = vld [vmem:[%s662_s2] sm:$0x3] }
  0x4d   :  { %417 = vmatpush3.msra.mxu0 %v195_v33  ;;  %442 = vmatpush3.msra.mxu1 %v223_v43  ;;  %v96_v60 = vrot.slane %v91_v58, %v95_v57  ;;  %v100_v61 = vrot.slane %v91_v58, %v99_v59 }
  0x4e   :  { %418 = vmatprep.subr.mxu0 %v210_v34  ;;  %443 = vmatprep.subr.mxu1 %v585_v0 }
  0x4f   :  { %419 = vmatpush3.msra.mxu0 %v194_v35  ;;  %444 = vmatpush3.msra.mxu1 %v222_v46 }
  0x50   :  { %420 = vmatprep.subr.mxu0 %v209_v36  ;;  %445 = vmatprep.subr.mxu1 %v585_v0 }
  0x51   :  { %421 = vmatpush3.msra.mxu0 %v193_v37  ;;  %446 = vmatpush3.msra.mxu1 %v221_v49 }
  0x52   :  { %422 = vmatprep.subr.mxu0 %v208_v38  ;;  %447 = vmatprep.subr.mxu1 %v585_v0 }
  0x53   :  { %423 = vmatpush3.msra.mxu0 %v192_v39  ;;  %448 = vmatpush3.msra.mxu1 %v220_v52 }
  0x54   :  { %424 = vmatprep.subr.mxu0 %v207_v40  ;;  %449 = vmatprep.subr.mxu1 %v585_v0 }
  0x55   :  { %425 = vmatpush3.msra.mxu0 %v191_v41  ;;  %450 = vmatpush3.msra.mxu1 %v219_v54 }
  0x56   :  { %426 = vmatprep.subr.mxu0 %v206_v42  ;;  %451 = vmatprep.mubr.msk.f32.mxu1 %vm586_vm2, %v585_v0 }
  0x57   :  { %427 = vmatpush3.msra.mxu0 %v190_v44  ;;  %452 = vmatmul.mubr.msk.f32.vlgmr.msra.gmra.mxu1 %vm103_vm1, %v636_v24 }
  0x58   :  { %428 = vmatprep.subr.mxu0 %v205_v45 }
  0x59   :  { %429 = vmatpush3.msra.mxu0 %v189_v47 }
  0x5a   :  { %430 = vmatprep.subr.mxu0 %v204_v48 }
  0x5b   :  { %431 = vmatpush3.msra.mxu0 %v188_v50 }
  0x5c   :  { %432 = vmatprep.subr.mxu0 %v203_v51 }
  0x5d   :  { %433 = vmatpush3.msra.mxu0 %v187_v53 }
 0x108   :  { %v180_v62 = vpop.f32.mrf.mxu1 }
 0x109   :  { %v181_v63 = vadd.f32 %v180_v62, %v96_v60 }
 0x10a   :  { %v182_v1 = vpop.f32.mrf.mxu1 }
 0x10b   :  { %v183_v2 = vadd.f32 %v182_v1, %v100_v61  ;;  %v185_v4 = vmax.f32 %v181_v63, 0.0 }
 0x10d   :  { %v186_v3 = vmax.f32 %v183_v2, 0.0 }
 0x10f   :  { %363 = vmatprep.mubr.f32.mxu0 %v186_v3 }
 0x110   :  { %364 = vmatmul.mubr.f32.vlgmr.msra.gmra.mxu0 %v185_v4 }
 0x117   :  { %v295_v0 = vpop.f32.mrf.mxu1 }
 0x119   :  { %v453_v5 = vpop.f32.mrf.mxu1 }
 0x1d0   :  { %v434_v6 = vpop.f32.mrf.mxu0 }
 0x1d2   :  { %v435_v7 = vpop.f32.mrf.mxu0 }
 0x1d3   :  { %v436_v8 = vadd.f32 %v435_v7, %v434_v6 }
 0x1d5   :  { %v366_v9 = vadd.f32 %v436_v8, %v295_v0 }
 0x1d7   :  { %369 = vst [vmem:[#allocation10] sm:$0xff] %v366_v9 }
 0x1d8   :  { %374 = vsyncadd [#allocation4], 96  ;;  %s587_s2 = smov [#allocation10]  }
 0x1d9   :  { %s375_s18 = sshll.u32 %s587_s2, 4  ;;  %s376_s18 = int_to_ptr.vmem [resolvable:$true] %s375_s18 }
 0x1da   :  { %s547_s19 = scalar_lea.vmem %s376_s18, 32  ;;  %s551_s20 = scalar_lea.vmem %s376_s18, 128 }
 0x1db   :  { %p548_p6 = scmp.ne.s32.totalorder %s376_s18, %s547_s19  ;;  %p552_p7 = scmp.lt.s32.totalorder %s376_s18, %s376_s18 }
 0x1dc   :  { %p553_p8 = scmp.lt.s32.totalorder %s551_s20, %s547_s19 }
 0x1de   :  { %p554_p9 = por %p553_p8, %p552_p7 }
 0x1e0   :  { %p555_p10 = pnand %p554_p9, %p548_p6 }
 0x1e2   :  { %558 = shalt.err (!%p555_p10)
}
 0x1e3   :  { %381 = dma.vmem_to_hbm [thread:$0]  %s376_s18, 32, %s665_s5, [#allocation4], %s579_s29, %s579_s29, %s580_s30  }
 0x1e4   :  { %573 = dma.done.wait [#allocation4], 128  }
 0x1e5   :  { %574 = vsyncadd [#allocation4], 4294967168 }
 0x1e6   :  { %385 = vsyncpa [#allocation3], 1 }
 0x1e7   :  { %386 = vsyncpa [#allocation6], 1 }
 0x1e8   :  { %387 = vsyncpa [#allocation9], 1 }
 0x1e9   :  { %388 = vsyncpa [#allocation4], 1 }

</bundles_post_ra>
